<compile_context>
chip_gen: v7x
topology: tpu7x:2x2x1
jax: 0.10.0
libtpu: 0.0.40
codegen_flags: <defaults>
</compile_context>

<pallas_src>
import jax
import jax.numpy as jnp
from jax.experimental import pallas as pl
from jax.experimental.pallas import tpu as pltpu


def _ensemble_kernel(x_ref, w_ref, b_ref, o_ref):
    """One batch tile: o = x_tile @ mean_m(W) + mean_m(b)."""
    num_models = w_ref.shape[0]
    inv_m = 1.0 / num_models

    # Cheap VPU reduction over the resident weight/bias stacks.
    w_mean = jnp.sum(w_ref[...], axis=0) * inv_m                    # (D_IN, D_OUT)
    b_mean = jnp.sum(b_ref[...], axis=0, keepdims=True) * inv_m     # (1, D_OUT)

    # Single MXU matmul with f32 accumulation; bias folded in once.
    y = jnp.dot(x_ref[...], w_mean, preferred_element_type=jnp.float32)
    o_ref[...] = (y + b_mean).astype(o_ref.dtype)


def ensembler_forward(x, weights, biases, *, batch_tile=256):
    """x: (B, D_IN) f32; weights: (M, D_IN, D_OUT) f32; biases: (M, D_OUT) f32."""
    B, D_IN = x.shape
    M, _, D_OUT = weights.shape

    # Large batch tiles when B allows it (MXU row utilization + a parallel
    # axis for v7x megacore); otherwise use the full batch as one tile
    # (full-extent blocks are always legal, regardless of (8, 128) rules).
    tb = batch_tile if (B % batch_tile == 0) else B
    grid = (B // tb,)

    return pl.pallas_call(
        _ensemble_kernel,
        out_shape=jax.ShapeDtypeStruct((B, D_OUT), jnp.float32),
        grid_spec=pltpu.PrefetchScalarGridSpec(
            num_scalar_prefetch=0,
            grid=grid,
            in_specs=[
                # Batch tile of the input.
                pl.BlockSpec((tb, D_IN), lambda i: (i, 0)),
                # Full weight stack, resident across all batch tiles.
                pl.BlockSpec((M, D_IN, D_OUT), lambda i: (0, 0, 0)),
                # Full bias stack, resident.
                pl.BlockSpec((M, D_OUT), lambda i: (0, 0)),
            ],
            out_specs=pl.BlockSpec((tb, D_OUT), lambda i: (i, 0)),
        ),
        compiler_params=pltpu.CompilerParams(
            # Batch tiles are independent -> shardable across TensorCores.
            dimension_semantics=("parallel",),
        ),
    )(x, weights, biases)


if __name__ == "__main__":
    # Small deterministic shapes: 3 models, batch=8, 128 -> 128 features
    # (keeps (8, 128) tiling trivially satisfied; grid is a single step).
    M, B, D_IN, D_OUT = 3, 8, 128, 128

    key = jax.random.PRNGKey(0)
    kx, kw, kb = jax.random.split(key, 3)

    x = jax.random.normal(kx, (B, D_IN), dtype=jnp.float32)
    weights = jax.random.normal(kw, (M, D_IN, D_OUT), dtype=jnp.float32) * 0.05
    biases = jax.random.normal(kb, (M, D_OUT), dtype=jnp.float32) * 0.1

    out = ensembler_forward(x, weights, biases)
    out = jax.block_until_ready(out)

    # Pure-JAX reference of Ensembler semantics: run each model, stack, mean.
    ref = jnp.stack(
        [x @ weights[m] + biases[m] for m in range(M)], axis=0
    ).mean(axis=0)

    assert out.shape == (B, D_OUT)
    assert jnp.allclose(out, ref, atol=1e-4, rtol=1e-4), "mismatch vs reference"

    print("KERNEL_OK")
</pallas_src>

<mosaic_0001>
module attributes {stable_mosaic.version = 11 : i64} {
  func.func @_ensemble_kernel(%arg0: i32, %arg1: memref<8x128xf32, #tpu.memory_space<vmem>>, %arg2: memref<3x128x128xf32, #tpu.memory_space<vmem>>, %arg3: memref<3x128xf32, #tpu.memory_space<vmem>>, %arg4: memref<8x128xf32, #tpu.memory_space<vmem>>) attributes {dimension_semantics = [#tpu.dimension_semantics<parallel>], iteration_bounds = array<i64: 1>, scalar_prefetch = 0 : i64, scratch_operands = 0 : i64, tpu.core_type = #tpu.core_type<tc>, window_params = [{transform_indices = @transform_0, window_bounds = array<i64: 8, 128>}, {pipeline_mode = #tpu.pipeline_mode<synchronous>, transform_indices = @transform_1, window_bounds = array<i64: 3, 128, 128>}, {pipeline_mode = #tpu.pipeline_mode<synchronous>, transform_indices = @transform_2, window_bounds = array<i64: 3, 128>}, {transform_indices = @transform_3, window_bounds = array<i64: 8, 128>}]} {
    %c0 = arith.constant 0 : index
    %c0_0 = arith.constant 0 : index
    %c0_1 = arith.constant 0 : index
    %0 = vector.load %arg2[%c0, %c0_0, %c0_1] : memref<3x128x128xf32, #tpu.memory_space<vmem>>, vector<3x128x128xf32>
    %cst = arith.constant dense<0.000000e+00> : vector<128x128xf32>
    %1 = vector.multi_reduction <add>, %0, %cst [0] : vector<3x128x128xf32> to vector<128x128xf32>
    %cst_2 = arith.constant 0.333333343 : f32
    %2 = vector.broadcast %cst_2 : f32 to vector<128x128xf32>
    %3 = arith.mulf %1, %2 : vector<128x128xf32>
    %c0_3 = arith.constant 0 : index
    %c0_4 = arith.constant 0 : index
    %4 = vector.load %arg3[%c0_3, %c0_4] : memref<3x128xf32, #tpu.memory_space<vmem>>, vector<3x128xf32>
    %cst_5 = arith.constant dense<0.000000e+00> : vector<128xf32>
    %5 = vector.multi_reduction <add>, %4, %cst_5 [0] : vector<3x128xf32> to vector<128xf32>
    %6 = vector.shape_cast %5 : vector<128xf32> to vector<1x128xf32>
    %cst_6 = arith.constant 0.333333343 : f32
    %7 = vector.broadcast %cst_6 : f32 to vector<1x128xf32>
    %8 = arith.mulf %6, %7 : vector<1x128xf32>
    %c0_7 = arith.constant 0 : index
    %c0_8 = arith.constant 0 : index
    %9 = vector.load %arg1[%c0_7, %c0_8] : memref<8x128xf32, #tpu.memory_space<vmem>>, vector<8x128xf32>
    %cst_9 = arith.constant dense<0.000000e+00> : vector<8x128xf32>
    %10 = tpu.matmul %9, %3, %cst_9 {dimension_numbers = #tpu.dot_dimension_numbers<[1], [0], [0], [1], [0, 0, 1, 1], [], []>} : vector<8x128xf32>, vector<128x128xf32>, vector<8x128xf32> -> vector<8x128xf32>
    %11 = vector.broadcast %8 : vector<1x128xf32> to vector<8x128xf32>
    %12 = arith.addf %10, %11 : vector<8x128xf32>
    %c0_10 = arith.constant 0 : index
    %c0_11 = arith.constant 0 : index
    %13 = vector.load %arg4[%c0_10, %c0_11] : memref<8x128xf32, #tpu.memory_space<vmem>>, vector<8x128xf32>
    tpu.vector_store %arg4[%c0_10, %c0_11], %12 {strides = array<i32>} : memref<8x128xf32, #tpu.memory_space<vmem>>, vector<8x128xf32>,
    return
  }
  func.func @transform_0(%arg0: i32) -> (i32, i32) {
    %c0_i32 = arith.constant 0 : i32
    %c0_i32_0 = arith.constant 0 : i32
    return %arg0, %c0_i32 : i32, i32
  }
  func.func @transform_1(%arg0: i32) -> (i32, i32, i32) {
    %c0_i32 = arith.constant 0 : i32
    %c0_i32_0 = arith.constant 0 : i32
    %c0_i32_1 = arith.constant 0 : i32
    %c0_i32_2 = arith.constant 0 : i32
    return %c0_i32, %c0_i32_0, %c0_i32_1 : i32, i32, i32
  }
  func.func @transform_2(%arg0: i32) -> (i32, i32) {
    %c0_i32 = arith.constant 0 : i32
    %c0_i32_0 = arith.constant 0 : i32
    %c0_i32_1 = arith.constant 0 : i32
    return %c0_i32, %c0_i32_0 : i32, i32
  }
  func.func @transform_3(%arg0: i32) -> (i32, i32) {
    %c0_i32 = arith.constant 0 : i32
    %c0_i32_0 = arith.constant 0 : i32
    return %arg0, %c0_i32 : i32, i32
  }
}

</mosaic_0001>

<bundles_post_ra>
// kernel: tpu_custom_call.1
= control target key start
LH: loop header
LB: loop body
LE: loop exit
PB: predicated region body
PF: predicated region fallthrough
CT: control target
= control target key end

     0   :  { %8 = vsyncpa [#allocation3], 0  ;;  %s473_s0 = inlined_call_operand.hbm [shape: f32[8,128], index: 0, kind: input, shape index: {}]   ;;  %s474_s1 = inlined_call_operand.hbm [shape: f32[3,128,128], index: 1, kind: input, shape index: {}]   ;;  %s475_s2 = inlined_call_operand.vmem [shape: f32[3,128], index: 2, kind: input, shape index: {}]   ;;  %s476_s3 = inlined_call_operand.hbm [shape: f32[8,128], index: 3, kind: output, shape index: {}]  }
   0x1   :  { %9 = vsyncpa [#allocation6], 0 }
   0x2   :  { %10 = vsyncpa [#allocation4], 0  ;;  %s391_s12 = smov [#allocation2]   ;;  %s392_s14 = smov [#allocation5]  }
   0x3   :  { %s17_s13 = sshll.u32 %s391_s12, 4  ;;  %s26_s15 = sshll.u32 %s392_s14, 4  ;;  %s18_s13 = int_to_ptr.vmem [resolvable:$true] %s17_s13  ;;  %s419_s15 = int_to_ptr.vmem [resolvable:$true] %s26_s15 }
   0x4   :  { %s319_s18 = scalar_lea.hbm %s473_s0, 128 }
   0x5   :  { %p320_p0 = scmp.ne.s32.totalorder %s473_s0, %s319_s18  ;;  %p323_p1 = scmp.lt.u32.totalorder %s319_s18, %s473_s0 }
   0x7   :  { %p325_p2 = pnand %p323_p1, %p320_p0 }
   0x9   :  { %328 = shalt.err (!%p325_p2)
}
   0xa   :  { %s329_s23 = scalar_lea.vmem %s18_s13, 128  ;;  %p334_p4 = scmp.lt.s32.totalorder %s18_s13, %s18_s13 }
   0xb   :  { %p330_p3 = scmp.ne.s32.totalorder %s18_s13, %s329_s23  ;;  %p335_p5 = scmp.lt.s32.totalorder %s329_s23, %s329_s23 }
   0xd   :  { %p336_p6 = por %p335_p5, %p334_p4 }
   0xf   :  { %p337_p7 = pnand %p336_p6, %p330_p3 }
  0x11   :  { %340 = shalt.err (!%p337_p7)
}
  0x12   :  { %20 = dma.hbm_to_vmem [thread:$0]  %s473_s0, 128, %s18_s13, [#allocation3]  }
  0x13   :  { %s341_s28 = scalar_lea.hbm %s474_s1, 6144 }
  0x14   :  { %p342_p8 = scmp.ne.s32.totalorder %s474_s1, %s341_s28  ;;  %p345_p9 = scmp.lt.u32.totalorder %s341_s28, %s474_s1 }
  0x16   :  { %p347_p10 = pnand %p345_p9, %p342_p8 }
  0x18   :  { %350 = shalt.err (!%p347_p10)
}
  0x19   :  { %s351_s6 = scalar_lea.vmem %s419_s15, 6144  ;;  %p356_p12 = scmp.lt.s32.totalorder %s419_s15, %s419_s15 }
  0x1a   :  { %p352_p11 = scmp.ne.s32.totalorder %s419_s15, %s351_s6  ;;  %p357_p13 = scmp.lt.s32.totalorder %s351_s6, %s351_s6 }
  0x1c   :  { %p358_p0 = por %p357_p13, %p356_p12 }
  0x1e   :  { %p359_p1 = pnand %p358_p0, %p352_p11 }
  0x20   :  { %362 = shalt.err (!%p359_p1)
}
  0x21   :  { %s393_s0 = smov 128   ;;  %s394_s7 = smov 8  }
  0x22   :  { %32 = dma.hbm_to_vmem [thread:$0]  %s474_s1, 6144, %s419_s15, [#allocation6], %s393_s0, %s393_s0, %s394_s7  }
  0x23   :  { %385 = dma.done.wait [#allocation3], 128  }
  0x24   :  { %386 = vsyncadd [#allocation3], 4294967168 }
  0x25   :  { %387 = dma.done.wait [#allocation6], 6144  }
  0x26   :  { %388 = vsyncadd [#allocation6], 4294961152  ;;  %v395_v0 = vmov 0.0|0.0   ;;  %vm396_vm0 = vmmov 0   ;;  %v397_v1 = vmov 0.0   ;;  %v41_v2 = vld [vmem:[#allocation5] sm:$0xff] }
  0x27   :  { %287 = vmatprep.subr.bf16.mxu0 %v395_v0  ;;  %284 = vmatprep.mubr.msk.f32.mxu0 %vm396_vm0, %v397_v1  ;;  %v42_v3 = vld [vmem:[#allocation5 + $0x8] sm:$0xff]  ;;  %v57_v4 = vld [vmem:[#allocation5 + $0x80] sm:$0xff]  ;;  %v43_v10 = vld [vmem:[#allocation5 + $0x10] sm:$0xff]  ;;  %vm138_vm1 = vcmask 1042432   ;;  %s398_s11 = smov [#allocation7]  }
  0x28   :  { %v58_v5 = vld [vmem:[#allocation5 + $0x88] sm:$0xff]  ;;  %v73_v6 = vld [vmem:[#allocation5 + $0x100] sm:$0xff]  ;;  %v89_v8 = vadd.f32 %v57_v4, %v41_v2  ;;  %v44_v11 = vld [vmem:[#allocation5 + $0x18] sm:$0xff]  ;;  %s225_s12 = sshll.u32 %s398_s11, 4  ;;  %s226_s12 = int_to_ptr.vmem [resolvable:$true] %s225_s12 }
  0x29   :  { %v74_v7 = vld [vmem:[#allocation5 + $0x108] sm:$0xff]  ;;  %v91_v9 = vadd.f32 %v58_v5, %v42_v3  ;;  %v59_v12 = vld [vmem:[#allocation5 + $0x90] sm:$0xff]  ;;  %v60_v14 = vld [vmem:[#allocation5 + $0x98] sm:$0xff]  ;;  %s363_s13 = scalar_lea.vmem %s226_s12, 128  ;;  %p368_p3 = scmp.lt.s32.totalorder %s226_s12, %s226_s12 }
  0x2a   :  { %v90_v13 = vadd.f32 %v89_v8, %v73_v6  ;;  %v75_v15 = vld [vmem:[#allocation5 + $0x110] sm:$0xff]  ;;  %v76_v16 = vld [vmem:[#allocation5 + $0x118] sm:$0xff]  ;;  %v93_v17 = vadd.f32 %v59_v12, %v43_v10  ;;  %v95_v19 = vadd.f32 %v60_v14, %v44_v11  ;;  %v45_v20 = vld [vmem:[#allocation5 + $0x20] sm:$0xff]  ;;  %p364_p2 = scmp.ne.s32.totalorder %s226_s12, %s363_s13  ;;  %p369_p4 = scmp.lt.s32.totalorder %s363_s13, %s363_s13 }
  0x2b   :  { %v92_v18 = vadd.f32 %v91_v9, %v74_v7  ;;  %v46_v21 = vld [vmem:[#allocation5 + $0x28] sm:$0xff]  ;;  %v61_v22 = vld [vmem:[#allocation5 + $0xa0] sm:$0xff]  ;;  %v47_v32 = vld [vmem:[#allocation5 + $0x30] sm:$0xff] }
  0x2c   :  { %v121_v23 = vmul.f32 0.33333334, %v90_v13  ;;  %v94_v24 = vadd.f32 %v93_v17, %v75_v15  ;;  %v62_v25 = vld [vmem:[#allocation5 + $0xa8] sm:$0xff]  ;;  %v77_v26 = vld [vmem:[#allocation5 + $0x120] sm:$0xff]  ;;  %v97_v28 = vadd.f32 %v61_v22, %v45_v20  ;;  %v96_v30 = vadd.f32 %v95_v19, %v76_v16  ;;  %v48_v33 = vld [vmem:[#allocation5 + $0x38] sm:$0xff]  ;;  %p370_p5 = por %p369_p4, %p368_p3 }
  0x2d   :  { %v78_v27 = vld [vmem:[#allocation5 + $0x128] sm:$0xff]  ;;  %v122_v29 = vmul.f32 0.33333334, %v92_v18  ;;  %v99_v31 = vadd.f32 %v62_v25, %v46_v21  ;;  %v63_v34 = vld [vmem:[#allocation5 + $0xb0] sm:$0xff]  ;;  %v64_v37 = vld [vmem:[#allocation5 + $0xb8] sm:$0xff] }
  0x2e   :  { %v123_v35 = vmul.f32 0.33333334, %v94_v24  ;;  %v98_v36 = vadd.f32 %v97_v28, %v77_v26  ;;  %v79_v38 = vld [vmem:[#allocation5 + $0x130] sm:$0xff]  ;;  %v80_v39 = vld [vmem:[#allocation5 + $0x138] sm:$0xff]  ;;  %v101_v40 = vadd.f32 %v63_v34, %v47_v32  ;;  %v124_v42 = vmul.f32 0.33333334, %v96_v30  ;;  %p371_p6 = pnand %p370_p5, %p364_p2 }
  0x2f   :  { %v288_v41 = vpack.c.bf16 %v122_v29, %v121_v23  ;;  %v100_v43 = vadd.f32 %v99_v31, %v78_v27  ;;  %v103_v44 = vadd.f32 %v64_v37, %v48_v33  ;;  %v49_v45 = vld [vmem:[#allocation5 + $0x40] sm:$0xff]  ;;  %v50_v46 = vld [vmem:[#allocation5 + $0x48] sm:$0xff]  ;;  %v51_v57 = vld [vmem:[#allocation5 + $0x50] sm:$0xff] }
  0x30   :  { %v65_v47 = vld [vmem:[#allocation5 + $0xc0] sm:$0xff]  ;;  %v125_v48 = vmul.f32 0.33333334, %v98_v36  ;;  %v102_v49 = vadd.f32 %v101_v40, %v79_v38  ;;  %v66_v50 = vld [vmem:[#allocation5 + $0xc8] sm:$0xff]  ;;  %v291_v52 = vpack.c.bf16 %v124_v42, %v123_v35  ;;  %v67_v58 = vld [vmem:[#allocation5 + $0xd0] sm:$0xff] }
  0x31   :  { %v105_v51 = vadd.f32 %v65_v47, %v49_v45  ;;  %289 = vmatpush3.bf16.msra.mxu0 %v288_v41  ;;  %v126_v53 = vmul.f32 0.33333334, %v100_v43  ;;  %v104_v54 = vadd.f32 %v103_v44, %v80_v39  ;;  %v81_v55 = vld [vmem:[#allocation5 + $0x140] sm:$0xff]  ;;  %v107_v56 = vadd.f32 %v66_v50, %v50_v46  ;;  %v82_v59 = vld [vmem:[#allocation5 + $0x148] sm:$0xff]  ;;  %v52_v60 = vld [vmem:[#allocation5 + $0x58] sm:$0xff] }
  0x32   :  { %290 = vmatprep.subr.bf16.mxu0 %v395_v0  ;;  %v68_v61 = vld [vmem:[#allocation5 + $0xd8] sm:$0xff]  ;;  %v127_v62 = vmul.f32 0.33333334, %v102_v49  ;;  %v109_v1 = vadd.f32 %v67_v58, %v51_v57  ;;  %v83_v5 = vld [vmem:[#allocation5 + $0x150] sm:$0xff]  ;;  %v53_v7 = vld [vmem:[#allocation5 + $0x60] sm:$0xff] }
  0x33   :  { %v106_v63 = vadd.f32 %v105_v51, %v81_v55  ;;  %v294_v2 = vpack.c.bf16 %v126_v53, %v125_v48  ;;  %v128_v3 = vmul.f32 0.33333334, %v104_v54  ;;  %v108_v4 = vadd.f32 %v107_v56, %v82_v59  ;;  %v69_v8 = vld [vmem:[#allocation5 + $0xe0] sm:$0xff]  ;;  %v84_v9 = vld [vmem:[#allocation5 + $0x158] sm:$0xff]  ;;  %v54_v10 = vld [vmem:[#allocation5 + $0x68] sm:$0xff] }
  0x34   :  { %v111_v6 = vadd.f32 %v68_v61, %v52_v60  ;;  %v70_v11 = vld [vmem:[#allocation5 + $0xe8] sm:$0xff]  ;;  %v110_v13 = vadd.f32 %v109_v1, %v83_v5  ;;  %v113_v14 = vadd.f32 %v69_v8, %v53_v7  ;;  %v85_v18 = vld [vmem:[#allocation5 + $0x160] sm:$0xff]  ;;  %v55_v20 = vld [vmem:[#allocation5 + $0x70] sm:$0xff] }
  0x35   :  { %292 = vmatpush3.bf16.msra.mxu0 %v291_v52  ;;  %v129_v12 = vmul.f32 0.33333334, %v106_v63  ;;  %v297_v15 = vpack.c.bf16 %v128_v3, %v127_v62  ;;  %v130_v16 = vmul.f32 0.33333334, %v108_v4  ;;  %v115_v19 = vadd.f32 %v70_v11, %v54_v10  ;;  %v71_v21 = vld [vmem:[#allocation5 + $0xf0] sm:$0xff]  ;;  %v86_v22 = vld [vmem:[#allocation5 + $0x168] sm:$0xff] }
  0x36   :  { %293 = vmatprep.subr.bf16.mxu0 %v395_v0  ;;  %v112_v17 = vadd.f32 %v111_v6, %v84_v9  ;;  %v56_v23 = vld [vmem:[#allocation5 + $0x78] sm:$0xff]  ;;  %v131_v25 = vmul.f32 0.33333334, %v110_v13  ;;  %v114_v26 = vadd.f32 %v113_v14, %v85_v18  ;;  %v117_v27 = vadd.f32 %v71_v21, %v55_v20  ;;  %v87_v32 = vld [vmem:[#allocation5 + $0x170] sm:$0xff] }
  0x37   :  { %v72_v24 = vld [vmem:[#allocation5 + $0xf8] sm:$0xff]  ;;  %v300_v28 = vpack.c.bf16 %v130_v16, %v129_v12  ;;  %v116_v30 = vadd.f32 %v115_v19, %v86_v22 }
  0x38   :  { %v132_v29 = vmul.f32 0.33333334, %v112_v17  ;;  %v119_v31 = vadd.f32 %v72_v24, %v56_v23  ;;  %v88_v33 = vld [vmem:[#allocation5 + $0x178] sm:$0xff]  ;;  %v133_v34 = vmul.f32 0.33333334, %v114_v26  ;;  %v118_v37 = vadd.f32 %v117_v27, %v87_v32 }
  0x39   :  { %295 = vmatpush3.bf16.msra.mxu0 %v294_v2  ;;  %v134_v36 = vmul.f32 0.33333334, %v116_v30  ;;  %v147_v43 = vld [vmem:[#allocation2] sm:$0xff] }
  0x3a   :  { %296 = vmatprep.subr.bf16.mxu0 %v395_v0  ;;  %v303_v35 = vpack.c.bf16 %v132_v29, %v131_v25  ;;  %v120_v38 = vadd.f32 %v119_v31, %v88_v33  ;;  %v135_v40 = vmul.f32 0.33333334, %v118_v37  ;;  %v137_v44 = vld [vmem:[%s475_s2] sm:$0x7] }
  0x3b   :  { %v306_v39 = vpack.c.bf16 %v134_v36, %v133_v34  ;;  %v139_v45 = vsel %vm138_vm1, %v137_v44, 0.0 }
  0x3c   :  { %v136_v41 = vmul.f32 0.33333334, %v120_v38  ;;  %v140_v46 = vrot.slane %v139_v45, 4 }
  0x3d   :  { %298 = vmatpush3.bf16.msra.mxu0 %v297_v15 }
  0x3e   :  { %299 = vmatprep.subr.bf16.mxu0 %v395_v0  ;;  %v309_v42 = vpack.c.bf16 %v136_v41, %v135_v40  ;;  %v141_v47 = vadd.f32 %v140_v46, %v139_v45 }
  0x40   :  { %v142_v48 = vrot.slane %v141_v47, 2 }
  0x41   :  { %301 = vmatpush3.bf16.msra.mxu0 %v300_v28 }
  0x42   :  { %302 = vmatprep.subr.bf16.mxu0 %v395_v0  ;;  %v143_v49 = vadd.f32 %v142_v48, %v141_v47 }
  0x44   :  { %v144_v50 = vrot.slane %v143_v49, 1 }
  0x45   :  { %304 = vmatpush3.bf16.msra.mxu0 %v303_v35 }
  0x46   :  { %305 = vmatprep.subr.bf16.mxu0 %v395_v0  ;;  %v145_v51 = vadd.f32 %v144_v50, %v143_v49 }
  0x48   :  { %v146_v52 = vmul.f32 0.33333334, %v145_v51 }
  0x49   :  { %307 = vmatpush3.bf16.msra.mxu0 %v306_v39 }
  0x4a   :  { %308 = vmatprep.subr.bf16.mxu0 %v395_v0 }
  0x4d   :  { %310 = vmatpush3.bf16.msra.mxu0 %v309_v42 }
  0x50   :  { %285 = vmatmul.mubr.f32.vlgmr.msra.gmra.mrb[0].mxu0 %v147_v43 }
 0x123   :  { %v214_v53 = vpop.f32.mrb[0].mxu0 }
 0x124   :  { %v215_v0 = vadd.f32 %v214_v53, %v146_v52  ;;  %v286_v54 = vpop.f32.mrb[1].mxu0 }
 0x126   :  { %218 = vst [vmem:[#allocation7] sm:$0xff] %v215_v0 }
 0x127   :  { %374 = shalt.err (!%p371_p6)
}
 0x128   :  { %s375_s15 = scalar_lea.hbm %s476_s3, 128 }
 0x129   :  { %p376_p7 = scmp.ne.s32.totalorder %s476_s3, %s375_s15  ;;  %p379_p8 = scmp.lt.u32.totalorder %s375_s15, %s476_s3 }
 0x12b   :  { %p381_p9 = pnand %p379_p8, %p376_p7 }
 0x12d   :  { %384 = shalt.err (!%p381_p9)
}
 0x12e   :  { %228 = dma.vmem_to_hbm [thread:$0]  %s226_s12, 128, %s476_s3, [#allocation4]  }
 0x12f   :  { %389 = dma.done.wait [#allocation4], 128  }
 0x130   :  { %390 = vsyncadd [#allocation4], 4294967168 }
 0x131   :  { %232 = vsyncpa [#allocation3], 1 }
 0x132   :  { %233 = vsyncpa [#allocation6], 1 }
 0x133   :  { %234 = vsyncpa [#allocation4], 1 }

</bundles_post_ra>
